<compile_context>
chip_gen: v6e
topology: v6e:2x2x1
jax: 0.10.0
libtpu: 0.0.40
codegen_flags: <defaults>
</compile_context>

<pallas_src>
import functools
import math

import jax
import jax.numpy as jnp
from jax.experimental import pallas as pl
from jax.experimental.pallas import tpu as pltpu


def _round_up(x: int, m: int) -> int:
    return ((x + m - 1) // m) * m


def _sublane_multiple(dtype) -> int:
    # f32 -> 8, bf16 -> 16, int8/fp8 -> 32 (rows packed per vreg sublane group).
    itemsize = jnp.dtype(dtype).itemsize
    return 8 * (4 // itemsize)


def _choose_batch_tile(B: int, tile_m: int, sub: int) -> int:
    """Batch tile: multiple of the dtype sublane pack, <= tile_m, >= 2 grid
    steps when the batch allows it (v7x megacore), small batch-pad waste."""
    if B <= sub:
        return _round_up(B, 8)                      # one tiny tile
    n_steps = max(2, -(-B // tile_m))               # at least 2 steps for 2 TCs
    tm = _round_up(-(-B // n_steps), sub)           # smallest tile giving n_steps
    return min(tm, tile_m)


def _fused_mlp_kernel(x_ref, *refs, n_layers: int):
    """Fused MLP. refs = (w1t, b1, w2t, b2, ..., wNt, bN, out_ref)."""
    o_ref = refs[-1]
    wb_refs = refs[:-1]
    h = x_ref[...]                          # (TM, Din), compute dtype
    for i in range(n_layers):
        wt = wb_refs[2 * i][...]            # (Din_i, Dout_pad_i), compute dtype
        b = wb_refs[2 * i + 1][...]         # (1, Dout_pad_i), f32
        y = jnp.dot(h, wt, preferred_element_type=jnp.float32)   # MXU, f32 acc
        y = y + b                           # f32 epilogue (v5e VPU has no bf16)
        if i < n_layers - 1:
            y = jnp.maximum(y, 0.0)         # ReLU
            h = y.astype(wt.dtype)          # next matmul operand in compute dtype
        else:
            o_ref[...] = y.astype(o_ref.dtype)


def linear_net_forward(packed_params, x, num_classes, *, tile_m=1024,
                       weight_buffer_count=2, vmem_limit_bytes=None):
    """LinearNet forward: x (B, C, H, W) -> logits (B, num_classes) f32."""
    B = x.shape[0]
    n_layers = len(packed_params)
    compute_dtype = packed_params[0][0].dtype

    h = x.reshape(B, -1).astype(compute_dtype)      # nn.Flatten() (+ bf16 cast)
    din = h.shape[1]
    if packed_params[0][0].shape[0] != din:
        raise ValueError("packed first-layer Din must equal flattened input size "
                         f"({packed_params[0][0].shape[0]} != {din})")

    # Batch tiling: tile rounded to the dtype sublane multiple, grid sharded
    # "parallel" across TensorCores; adaptive tile keeps pad waste small.
    sub = _sublane_multiple(compute_dtype)
    tm = _choose_batch_tile(B, tile_m, sub)
    b_pad = _round_up(B, tm)
    if b_pad != B:
        h = jnp.pad(h, ((0, b_pad - B), (0, 0)))

    dout_pad = packed_params[-1][0].shape[1]

    def _const_spec(shape):
        # Weights/biases are full-block and constant across the batch grid, so
        # Pallas only DMAs them once.  weight_buffer_count=1 (pl.Buffered)
        # halves their VMEM footprint at zero perf cost — useful on v7x
        # (64 MiB VMEM) if hidden widths grow to 2k-4k.
        if weight_buffer_count == 2:
            return pl.BlockSpec(shape, lambda i: (0, 0))
        return pl.BlockSpec(shape, lambda i: (0, 0),
                            pipeline_mode=pl.Buffered(weight_buffer_count))

    flat_wb = []
    in_specs = [pl.BlockSpec((tm, din), lambda i: (i, 0))]
    for wt, b in packed_params:
        flat_wb += [wt, b]
        in_specs.append(_const_spec(wt.shape))
        in_specs.append(_const_spec(b.shape))

    # Advisory cost estimate (helps XLA schedule the surrounding cast / slice).
    flops = 2 * b_pad * sum(int(wt.shape[0]) * int(wt.shape[1])
                            for wt, _ in packed_params)
    bytes_accessed = (
        h.size * h.dtype.itemsize
        + sum(wt.size * wt.dtype.itemsize + b.size * b.dtype.itemsize
              for wt, b in packed_params)
        + b_pad * dout_pad * 4)
    cost = pl.CostEstimate(flops=flops, transcendentals=0,
                           bytes_accessed=bytes_accessed)

    kernel = functools.partial(_fused_mlp_kernel, n_layers=n_layers)
    out = pl.pallas_call(
        kernel,
        out_shape=jax.ShapeDtypeStruct((b_pad, dout_pad), jnp.float32),
        grid=(b_pad // tm,),
        in_specs=in_specs,
        out_specs=pl.BlockSpec((tm, dout_pad), lambda i: (i, 0)),
        compiler_params=pltpu.CompilerParams(
            dimension_semantics=("parallel",),
            vmem_limit_bytes=vmem_limit_bytes),
        cost_estimate=cost,
    )(h, *flat_wb)
    return out[:B, :num_classes]


def init_linear_params(key, in_features, out_features):
    """PyTorch nn.Linear default init: U(-1/sqrt(fan_in), +1/sqrt(fan_in))."""
    kw, kb = jax.random.split(key)
    bound = 1.0 / math.sqrt(in_features)
    w = jax.random.uniform(kw, (out_features, in_features),
                           minval=-bound, maxval=bound, dtype=jnp.float32)
    b = jax.random.uniform(kb, (out_features,),
                           minval=-bound, maxval=bound, dtype=jnp.float32)
    return w, b


def make_linear_net_params(key, input_size, layer_sizes, num_classes):
    params = []
    dims_in = [input_size] + list(layer_sizes)
    dims_out = list(layer_sizes) + [num_classes]
    for din, dout in zip(dims_in, dims_out):
        key, sub = jax.random.split(key)
        params.append(init_linear_params(sub, din, dout))
    return params


def pack_params_for_pallas(params, compute_dtype=jnp.bfloat16):
    """One-time transpose + zero-pad.  Dout is padded to a multiple of 128
    (lane-dense outputs); Din is only padded for hidden layers so it matches
    the previous layer's padded Dout — the first layer keeps Din = input_size
    (no wrapper-side pad of x needed).  Zero pads are numerically exact."""
    packed = []
    for li, (w, b) in enumerate(params):
        dout, din = w.shape
        din_pad = din if li == 0 else _round_up(din, 128)
        dout_pad = _round_up(dout, 128)
        wt = jnp.zeros((din_pad, dout_pad), jnp.float32).at[:din, :dout].set(w.T)
        bp = jnp.zeros((1, dout_pad), jnp.float32).at[0, :dout].set(b)
        packed.append((wt.astype(compute_dtype), bp))    # bias stays f32
    return packed


if __name__ == "__main__":
    key = jax.random.PRNGKey(0)
    k_x, k_p = jax.random.split(key)

    # MNIST-like config at small scale: batch=32, image (1, 28, 28) ->
    # input_size=784, hidden layer_sizes=[128, 64], num_classes=10.
    B, C, H, W = 32, 1, 28, 28
    input_size = C * H * W
    layer_sizes = [128, 64]
    num_classes = 10

    x = jax.random.normal(k_x, (B, C, H, W), dtype=jnp.float32)
    params = make_linear_net_params(k_p, input_size, layer_sizes, num_classes)

    # Pure-JAX reference of the same math (PyTorch semantics).
    ref = x.reshape(B, -1)
    for i, (w, b) in enumerate(params):
        ref = ref @ w.T + b
        if i != len(params) - 1:
            ref = jnp.maximum(ref, 0.0)

    fwd = jax.jit(functools.partial(linear_net_forward, num_classes=num_classes))

    # Default path: bf16 streaming for x and weights, f32 accumulate/epilogue.
    # Note: this quantizes the input activations too (intentional).
    packed_bf16 = pack_params_for_pallas(params)
    logits_bf16 = fwd(packed_bf16, x)
    jax.block_until_ready(logits_bf16)
    assert logits_bf16.shape == (B, num_classes)
    assert bool(jnp.all(jnp.isfinite(logits_bf16)))
    assert jnp.allclose(logits_bf16, ref, atol=2e-1, rtol=2e-1)

    # f32 path (bit-for-bit the same math as the reference, all generations).
    packed_f32 = pack_params_for_pallas(params, jnp.float32)
    logits_f32 = fwd(packed_f32, x)
    jax.block_until_ready(logits_f32)
    assert logits_f32.shape == (B, num_classes)
    assert jnp.allclose(logits_f32, ref, atol=1e-4, rtol=1e-4)

    # layer_sizes == [] branch of the module (single Linear, no ReLU).
    params0 = make_linear_net_params(jax.random.PRNGKey(1), input_size, [],
                                     num_classes)
    ref0 = x.reshape(B, -1) @ params0[0][0].T + params0[0][1]
    logits0 = fwd(pack_params_for_pallas(params0, jnp.float32), x)
    jax.block_until_ready(logits0)
    assert jnp.allclose(logits0, ref0, atol=1e-4, rtol=1e-4)

    print("KERNEL_OK")
</pallas_src>

<mosaic_0001>
module attributes {stable_mosaic.version = 11 : i64} {
  func.func @_fused_mlp_kernel(%arg0: i32, %arg1: memref<16x784xbf16, #tpu.memory_space<vmem>>, %arg2: memref<784x128xbf16, #tpu.memory_space<vmem>>, %arg3: memref<1x128xf32, #tpu.memory_space<vmem>>, %arg4: memref<128x128xbf16, #tpu.memory_space<vmem>>, %arg5: memref<1x128xf32, #tpu.memory_space<vmem>>, %arg6: memref<128x128xbf16, #tpu.memory_space<vmem>>, %arg7: memref<1x128xf32, #tpu.memory_space<vmem>>, %arg8: memref<16x128xf32, #tpu.memory_space<vmem>>) attributes {dimension_semantics = [#tpu.dimension_semantics<parallel>], iteration_bounds = array<i64: 2>, scalar_prefetch = 0 : i64, scratch_operands = 0 : i64, tpu.core_type = #tpu.core_type<tc>, window_params = [{transform_indices = @transform_0, window_bounds = array<i64: 16, 784>}, {pipeline_mode = #tpu.pipeline_mode<synchronous>, transform_indices = @transform_1, window_bounds = array<i64: 784, 128>}, {pipeline_mode = #tpu.pipeline_mode<synchronous>, transform_indices = @transform_2, window_bounds = array<i64: 1, 128>}, {pipeline_mode = #tpu.pipeline_mode<synchronous>, transform_indices = @transform_3, window_bounds = array<i64: 128, 128>}, {pipeline_mode = #tpu.pipeline_mode<synchronous>, transform_indices = @transform_4, window_bounds = array<i64: 1, 128>}, {pipeline_mode = #tpu.pipeline_mode<synchronous>, transform_indices = @transform_5, window_bounds = array<i64: 128, 128>}, {pipeline_mode = #tpu.pipeline_mode<synchronous>, transform_indices = @transform_6, window_bounds = array<i64: 1, 128>}, {transform_indices = @transform_7, window_bounds = array<i64: 16, 128>}]} {
    %c0 = arith.constant 0 : index
    %c0_0 = arith.constant 0 : index
    %0 = vector.load %arg1[%c0, %c0_0] : memref<16x784xbf16, #tpu.memory_space<vmem>>, vector<16x784xbf16>
    %c0_1 = arith.constant 0 : index
    %c0_2 = arith.constant 0 : index
    %1 = vector.load %arg2[%c0_1, %c0_2] : memref<784x128xbf16, #tpu.memory_space<vmem>>, vector<784x128xbf16>
    %c0_3 = arith.constant 0 : index
    %c0_4 = arith.constant 0 : index
    %2 = vector.load %arg3[%c0_3, %c0_4] : memref<1x128xf32, #tpu.memory_space<vmem>>, vector<1x128xf32>
    %cst = arith.constant dense<0.000000e+00> : vector<16x128xf32>
    %3 = tpu.matmul %0, %1, %cst {dimension_numbers = #tpu.dot_dimension_numbers<[1], [0], [0], [1], [0, 0, 1, 1], [], []>} : vector<16x784xbf16>, vector<784x128xbf16>, vector<16x128xf32> -> vector<16x128xf32>
    %4 = vector.broadcast %2 : vector<1x128xf32> to vector<16x128xf32>
    %5 = arith.addf %3, %4 : vector<16x128xf32>
    %cst_5 = arith.constant 0.000000e+00 : f32
    %6 = vector.broadcast %cst_5 : f32 to vector<16x128xf32>
    %7 = arith.maximumf %5, %6 : vector<16x128xf32>
    %8 = arith.truncf %7 : vector<16x128xf32> to vector<16x128xbf16>
    %c0_6 = arith.constant 0 : index
    %c0_7 = arith.constant 0 : index
    %9 = vector.load %arg4[%c0_6, %c0_7] : memref<128x128xbf16, #tpu.memory_space<vmem>>, vector<128x128xbf16>
    %c0_8 = arith.constant 0 : index
    %c0_9 = arith.constant 0 : index
    %10 = vector.load %arg5[%c0_8, %c0_9] : memref<1x128xf32, #tpu.memory_space<vmem>>, vector<1x128xf32>
    %cst_10 = arith.constant dense<0.000000e+00> : vector<16x128xf32>
    %11 = tpu.matmul %8, %9, %cst_10 {dimension_numbers = #tpu.dot_dimension_numbers<[1], [0], [0], [1], [0, 0, 1, 1], [], []>} : vector<16x128xbf16>, vector<128x128xbf16>, vector<16x128xf32> -> vector<16x128xf32>
    %12 = vector.broadcast %10 : vector<1x128xf32> to vector<16x128xf32>
    %13 = arith.addf %11, %12 : vector<16x128xf32>
    %cst_11 = arith.constant 0.000000e+00 : f32
    %14 = vector.broadcast %cst_11 : f32 to vector<16x128xf32>
    %15 = arith.maximumf %13, %14 : vector<16x128xf32>
    %16 = arith.truncf %15 : vector<16x128xf32> to vector<16x128xbf16>
    %c0_12 = arith.constant 0 : index
    %c0_13 = arith.constant 0 : index
    %17 = vector.load %arg6[%c0_12, %c0_13] : memref<128x128xbf16, #tpu.memory_space<vmem>>, vector<128x128xbf16>
    %c0_14 = arith.constant 0 : index
    %c0_15 = arith.constant 0 : index
    %18 = vector.load %arg7[%c0_14, %c0_15] : memref<1x128xf32, #tpu.memory_space<vmem>>, vector<1x128xf32>
    %cst_16 = arith.constant dense<0.000000e+00> : vector<16x128xf32>
    %19 = tpu.matmul %16, %17, %cst_16 {dimension_numbers = #tpu.dot_dimension_numbers<[1], [0], [0], [1], [0, 0, 1, 1], [], []>} : vector<16x128xbf16>, vector<128x128xbf16>, vector<16x128xf32> -> vector<16x128xf32>
    %20 = vector.broadcast %18 : vector<1x128xf32> to vector<16x128xf32>
    %21 = arith.addf %19, %20 : vector<16x128xf32>
    %c0_17 = arith.constant 0 : index
    %c0_18 = arith.constant 0 : index
    %22 = vector.load %arg8[%c0_17, %c0_18] : memref<16x128xf32, #tpu.memory_space<vmem>>, vector<16x128xf32>
    tpu.vector_store %arg8[%c0_17, %c0_18], %21 {strides = array<i32>} : memref<16x128xf32, #tpu.memory_space<vmem>>, vector<16x128xf32>,
    return
  }
  func.func @transform_0(%arg0: i32) -> (i32, i32) {
    %c0_i32 = arith.constant 0 : i32
    %c0_i32_0 = arith.constant 0 : i32
    return %arg0, %c0_i32 : i32, i32
  }
  func.func @transform_1(%arg0: i32) -> (i32, i32) {
    %c0_i32 = arith.constant 0 : i32
    %c0_i32_0 = arith.constant 0 : i32
    %c0_i32_1 = arith.constant 0 : i32
    return %c0_i32, %c0_i32_0 : i32, i32
  }
  func.func @transform_2(%arg0: i32) -> (i32, i32) {
    %c0_i32 = arith.constant 0 : i32
    %c0_i32_0 = arith.constant 0 : i32
    %c0_i32_1 = arith.constant 0 : i32
    return %c0_i32, %c0_i32_0 : i32, i32
  }
  func.func @transform_3(%arg0: i32) -> (i32, i32) {
    %c0_i32 = arith.constant 0 : i32
    %c0_i32_0 = arith.constant 0 : i32
    %c0_i32_1 = arith.constant 0 : i32
    return %c0_i32, %c0_i32_0 : i32, i32
  }
  func.func @transform_4(%arg0: i32) -> (i32, i32) {
    %c0_i32 = arith.constant 0 : i32
    %c0_i32_0 = arith.constant 0 : i32
    %c0_i32_1 = arith.constant 0 : i32
    return %c0_i32, %c0_i32_0 : i32, i32
  }
  func.func @transform_5(%arg0: i32) -> (i32, i32) {
    %c0_i32 = arith.constant 0 : i32
    %c0_i32_0 = arith.constant 0 : i32
    %c0_i32_1 = arith.constant 0 : i32
    return %c0_i32, %c0_i32_0 : i32, i32
  }
  func.func @transform_6(%arg0: i32) -> (i32, i32) {
    %c0_i32 = arith.constant 0 : i32
    %c0_i32_0 = arith.constant 0 : i32
    %c0_i32_1 = arith.constant 0 : i32
    return %c0_i32, %c0_i32_0 : i32, i32
  }
  func.func @transform_7(%arg0: i32) -> (i32, i32) {
    %c0_i32 = arith.constant 0 : i32
    %c0_i32_0 = arith.constant 0 : i32
    return %arg0, %c0_i32 : i32, i32
  }
}

</mosaic_0001>

<bundles_post_ra>
// kernel: linear_net_forward.1
= control target key start
LH: loop header
LB: loop body
LE: loop exit
PB: predicated region body
PF: predicated region fallthrough
CT: control target
= control target key end

     0   :  { %s1539_s24 = smov 0   ;;  %s1798_s0 = inlined_call_operand.vmem [shape: bf16[32,784], index: 0, kind: input, shape index: {}]   ;;  %s1799_s1 = inlined_call_operand.vmem [shape: bf16[784,128], index: 1, kind: input, shape index: {}]   ;;  %s1800_s2 = inlined_call_operand.vmem [shape: f32[1,128], index: 2, kind: input, shape index: {}]   ;;  %s1801_s3 = inlined_call_operand.vmem [shape: bf16[128,128], index: 3, kind: input, shape index: {}]   ;;  %s1802_s4 = inlined_call_operand.vmem [shape: f32[1,128], index: 4, kind: input, shape index: {}]   ;;  %s1803_s5 = inlined_call_operand.vmem [shape: bf16[128,128], index: 5, kind: input, shape index: {}]   ;;  %s1804_s6 = inlined_call_operand.vmem [shape: f32[1,128], index: 6, kind: input, shape index: {}]   ;;  %s1805_s7 = inlined_call_operand.vmem [shape: f32[32,128], index: 7, kind: output, shape index: {}]  }
   0x1 LB: > { %s1184_s25 = sadd.s32 4294967295, %s1495_s24   ;;  %p1188_p0 = scmp.ge.s32.totalorder %s1495_s24, 1  ;;  %s1495_s24 = sphi %s1539_s24, %s17_s24  }
   0x2   : > { %p239_p1 = scmp.lt.s32.totalorder %s1495_s24, 3 }
   0x4   : > { %p240_p2 = pnand %p1188_p0, %p239_p1 }
   0x5   : > { %s1189_s10 = sshll.u32 (!%p240_p2), %s1184_s25, 1 }
   0x6   : > { %243 = sbr.rel (%p240_p2) target bundleno = 688 (0x2b0), region = 48  ;;  %p273_p3 = scmp.lt.s32.totalorder (!%p240_p2), %s1189_s10, 3 }
   0xb   : > { %v1414_v0 = vld [vmem:[%s1799_s1 + $0x78] sm:$0xff]   ;;  %v1418_v4 = vld [vmem:[%s1799_s1 + $0x70] sm:$0xff]   ;;  %v1422_v8 = vld [vmem:[%s1799_s1 + $0x68] sm:$0xff]   ;;  %s1807_s10 = smov (!%p273_p3, %s1189_s10), 3  ;;  %v1497_v38 = vmov 0.0   ;;  %vm1498_vm0 = vmmov 0  }
   0xc   : > { %v1415_v1 = vld [vmem:[%s1799_s1 + $0x38] sm:$0xff]   ;;  %1271 = vmatprep.subr.bf16.mxu0 %v1414_v0  ;;  %v1419_v5 = vld [vmem:[%s1799_s1 + $0x30] sm:$0xff]   ;;  %v1423_v9 = vld [vmem:[%s1799_s1 + $0x28] sm:$0xff]   ;;  %s1403_s12 = smul.u32 28, %s1807_s10  ;;  %vm728_vm1 = vcmask 130048   ;;  %s1192_s17 = sshll.u32 %s1807_s10, 3 }
   0xd   : > { %v1416_v2 = vld [vmem:[%s1799_s1 + $0xf8] sm:$0xff]   ;;  %1272 = vmatpush3.bf16.msra.mxu0 %v1415_v1  ;;  %v1420_v6 = vld [vmem:[%s1799_s1 + $0xf0] sm:$0xff]   ;;  %v1424_v10 = vld [vmem:[%s1799_s1 + $0xe8] sm:$0xff]   ;;  %s283_s21 = scalar_lea.vmem %s1805_s7, %s1192_s17 }
   0xe   : > { %v1417_v3 = vld [vmem:[%s1799_s1 + $0xb8] sm:$0xff]   ;;  %1293 = vmatprep.subr.bf16.mxu1 %v1416_v2  ;;  %1273 = vmatprep.subr.bf16.mxu0 %v1418_v4  ;;  %v1421_v7 = vld [vmem:[%s1799_s1 + $0xb0] sm:$0xff]   ;;  %v1425_v11 = vld [vmem:[%s1799_s1 + $0xa8] sm:$0xff]   ;;  %s1642_s22 = scalar_lea.vmem %s1798_s0, %s1403_s12 }
   0xf   : > { %1294 = vmatpush3.bf16.msra.mxu1 %v1417_v3  ;;  %v1426_v12 = vld [vmem:[%s1799_s1 + $0x60] sm:$0xff]   ;;  %v1430_v16 = vld [vmem:[%s1799_s1 + $0x58] sm:$0xff]   ;;  %v1434_v20 = vld [vmem:[%s1799_s1 + $0x50] sm:$0xff]  }
  0x10   : > { %1295 = vmatprep.subr.bf16.mxu1 %v1420_v6  ;;  %v1427_v13 = vld [vmem:[%s1799_s1 + $0x20] sm:$0xff]   ;;  %v1431_v17 = vld [vmem:[%s1799_s1 + $0x18] sm:$0xff]   ;;  %v1435_v21 = vld [vmem:[%s1799_s1 + $0x10] sm:$0xff]  }
  0x11   : > { %1274 = vmatpush3.bf16.msra.mxu0 %v1419_v5  ;;  %v1428_v14 = vld [vmem:[%s1799_s1 + $0xe0] sm:$0xff]   ;;  %v1432_v18 = vld [vmem:[%s1799_s1 + $0xd8] sm:$0xff]   ;;  %v1436_v22 = vld [vmem:[%s1799_s1 + $0xd0] sm:$0xff]  }
  0x12   : > { %1275 = vmatprep.subr.bf16.mxu0 %v1422_v8  ;;  %v1429_v15 = vld [vmem:[%s1799_s1 + $0xa0] sm:$0xff]   ;;  %v1433_v19 = vld [vmem:[%s1799_s1 + $0x98] sm:$0xff]   ;;  %v1437_v23 = vld [vmem:[%s1799_s1 + $0x90] sm:$0xff]  }
  0x13   : > { %1296 = vmatpush3.bf16.msra.mxu1 %v1421_v7  ;;  %v1438_v24 = vld [vmem:[%s1799_s1 + $0x48] sm:$0xff]   ;;  %v1442_v28 = vld [vmem:[%s1799_s1 + $0x40] sm:$0xff]   ;;  %v1449_v34 = vld [vmem:[%s1799_s1 + $0x178] sm:$0xff]  }
  0x14   : > { %1297 = vmatprep.subr.bf16.mxu1 %v1424_v10  ;;  %v1439_v25 = vld [vmem:[%s1799_s1 + $0x8] sm:$0xff]   ;;  %v1443_v29 = vld [vmem:[%s1799_s1] sm:$0xff]   ;;  %v1453_v37 = vld [vmem:[%s1799_s1 + $0x138] sm:$0xff]  }
  0x15   : > { %1276 = vmatpush3.bf16.msra.mxu0 %v1423_v9  ;;  %v1440_v26 = vld [vmem:[%s1799_s1 + $0xc8] sm:$0xff]   ;;  %v1444_v30 = vld [vmem:[%s1799_s1 + $0xc0] sm:$0xff]   ;;  %v1454_v39 = vld [vmem:[%s1799_s1 + $0x170] sm:$0xff]  }
  0x16   : > { %1277 = vmatprep.subr.bf16.mxu0 %v1426_v12  ;;  %v1441_v27 = vld [vmem:[%s1799_s1 + $0x88] sm:$0xff]   ;;  %v1445_v31 = vld [vmem:[%s1642_s22] ss:$28 sps:$4 sm:$0xff]   ;;  %v1455_v40 = vld [vmem:[%s1799_s1 + $0x130] sm:$0xff]  }
  0x17   : > { %1298 = vmatpush3.bf16.msra.mxu1 %v1425_v11  ;;  %v1447_v32 = vld [vmem:[%s1642_s22 + $0x4] ss:$28 sps:$4 sm:$0xff]   ;;  %v1452_v36 = vld [vmem:[%s1642_s22 + $0xc] ss:$28 sps:$4 sm:$0xff]   ;;  %v1460_v45 = vld [vmem:[%s1799_s1 + $0x158] sm:$0xff]  }
  0x18   : > { %1299 = vmatprep.subr.bf16.mxu1 %v1428_v14  ;;  %v1448_v33 = vld [vmem:[%s1799_s1 + $0x80] sm:$0xff]   ;;  %764 = vmatprep.mubr.bf16.mxu0 %v1447_v32  ;;  %v1456_v41 = vld [vmem:[%s1799_s1 + $0x168] sm:$0xff]   ;;  %v1461_v46 = vld [vmem:[%s1799_s1 + $0x118] sm:$0xff]  }
  0x19   : > { %1278 = vmatpush3.bf16.msra.mxu0 %v1427_v13  ;;  %v1450_v35 = vld [vmem:[%s1642_s22 + $0x8] ss:$28 sps:$4 sm:$0xff]   ;;  %805 = vmatprep.mubr.bf16.mxu1 %v1452_v36  ;;  %v1462_v47 = vld [vmem:[%s1799_s1 + $0x150] sm:$0xff]   ;;  %v1473_v57 = vld [vmem:[%s1801_s3 + $0x38] sm:$0xff]  }
  0x1a   : > { %1279 = vmatprep.subr.bf16.mxu0 %v1430_v16  ;;  %v1457_v42 = vld [vmem:[%s1799_s1 + $0x128] sm:$0xff]   ;;  %v1458_v43 = vld [vmem:[%s1799_s1 + $0x160] sm:$0xff]   ;;  %v1463_v49 = vld [vmem:[%s1799_s1 + $0x110] sm:$0xff]  }
  0x1b   : > { %1300 = vmatpush3.bf16.msra.mxu1 %v1429_v15  ;;  %v1459_v44 = vld [vmem:[%s1799_s1 + $0x120] sm:$0xff]   ;;  %v1471_v50 = vld [vmem:[%s1642_s22 + $0x14] ss:$28 sps:$4 sm:$0xff]   ;;  %v1464_v51 = vld [vmem:[%s1799_s1 + $0x148] sm:$0xff]  }
  0x1c   : > { %1301 = vmatprep.subr.bf16.mxu1 %v1432_v18  ;;  %v1468_v48 = vld [vmem:[%s1799_s1 + $0x180] sm:$0xff]   ;;  %v1472_v52 = vld [vmem:[%s1642_s22 + $0x18] ss:$28 sps:$4 sm:$0xff]   ;;  %v1465_v53 = vld [vmem:[%s1799_s1 + $0x108] sm:$0xff]  }
  0x1d   : > { %1280 = vmatpush3.bf16.msra.mxu0 %v1431_v17  ;;  %v1466_v54 = vld [vmem:[%s1799_s1 + $0x140] sm:$0xff]   ;;  %v1469_v56 = vld [vmem:[%s1642_s22 + $0x10] ss:$28 sps:$4 sm:$0xff]   ;;  %v1477_v61 = vld [vmem:[%s1801_s3 + $0x18] sm:$0xff]  }
  0x1e   : > { %1281 = vmatprep.subr.bf16.mxu0 %v1434_v20  ;;  %v1467_v55 = vld [vmem:[%s1799_s1 + $0x100] sm:$0xff]   ;;  %v1474_v58 = vld [vmem:[%s1801_s3 + $0x30] sm:$0xff]   ;;  %v1475_v59 = vld [vmem:[%s1801_s3 + $0x28] sm:$0xff]  }
  0x1f   : > { %1302 = vmatpush3.bf16.msra.mxu1 %v1433_v19  ;;  %v1476_v60 = vld [vmem:[%s1801_s3 + $0x20] sm:$0xff]   ;;  %v1478_v62 = vld [vmem:[%s1801_s3 + $0x10] sm:$0xff]   ;;  %v1479_v63 = vld [vmem:[%s1801_s3 + $0x8] sm:$0xff]  }
  0x20   : > { %1303 = vmatprep.subr.bf16.mxu1 %v1436_v22  ;;  %v1480_v0 = vld [vmem:[%s1801_s3] sm:$0xff]   ;;  %v1481_v1 = vld [vmem:[%s1803_s5 + $0x38] sm:$0xff]   ;;  %v1482_v2 = vld [vmem:[%s1803_s5 + $0x30] sm:$0xff]  }
  0x21   : > { %1282 = vmatpush3.bf16.msra.mxu0 %v1435_v21  ;;  %v1483_v3 = vld [vmem:[%s1803_s5 + $0x28] sm:$0xff]   ;;  %v1484_v4 = vld [vmem:[%s1803_s5 + $0x20] sm:$0xff]   ;;  %v1485_v5 = vld [vmem:[%s1803_s5 + $0x18] sm:$0xff]  }
  0x22   : > { %1283 = vmatprep.subr.bf16.mxu0 %v1438_v24  ;;  %v1193_v18 = vld [vmem:[%s1800_s2] ss:$0 sm:$0xff] }
  0x23   : > { %1304 = vmatpush3.bf16.msra.mxu1 %v1437_v23 }
  0x24   : > { %1305 = vmatprep.subr.bf16.mxu1 %v1440_v26 }
  0x25   : > { %1284 = vmatpush3.bf16.msra.mxu0 %v1439_v25 }
  0x26   : > { %1285 = vmatprep.subr.bf16.mxu0 %v1442_v28 }
  0x27   : > { %1306 = vmatpush3.bf16.msra.mxu1 %v1441_v27 }
  0x28   : > { %1307 = vmatprep.subr.bf16.mxu1 %v1444_v30 }
  0x29   : > { %1286 = vmatpush3.bf16.msra.mxu0 %v1443_v29 }
  0x2a   : > { %1315 = vmatprep.subr.bf16.mxu0 %v1449_v34 }
  0x2b   : > { %1308 = vmatpush3.bf16.msra.mxu1 %v1448_v33 }
  0x2c   : > { %765 = vmatmul.mubr.bf16.vlgmr.msra.gmra.mxu0 %v1445_v31  ;;  %1357 = vmatprep.subr.bf16.mxu1 %v1497_v38 }
  0x2d   : > { %1316 = vmatpush3.bf16.msra.mxu0 %v1453_v37  ;;  %846 = vmatprep.mubr.bf16.mxu0 %v1471_v50 }
  0x2e   : > { %806 = vmatmul.mubr.bf16.vlgmr.msra.gmra.mxu1 %v1450_v35  ;;  %1317 = vmatprep.subr.bf16.mxu0 %v1454_v39 }
  0x2f   : > { %1359 = vmatprep.mubr.msk.bf16.mxu1 %vm1498_vm0, %v1497_v38  ;;  %1358 = vmatpush3.bf16.msra.mxu1 %v1468_v48 }
  0x30   : > { %1363 = vmatprep.subr.bf16.mxu1 %v1497_v38 }
  0x31   : > { %1318 = vmatpush3.bf16.msra.mxu0 %v1455_v40 }
  0x32   : > { %1319 = vmatprep.subr.bf16.mxu0 %v1456_v41  ;;  %v1486_v41 = vld [vmem:[%s1803_s5 + $0x10] sm:$0xff]  }
  0x35   : > { %1320 = vmatpush3.bf16.msra.mxu0 %v1457_v42  ;;  %v1487_v42 = vld [vmem:[%s1803_s5 + $0x8] sm:$0xff]  }
  0x36   : > { %1321 = vmatprep.subr.bf16.mxu0 %v1458_v43  ;;  %1360 = vmatmul.mubr.msk.bf16.vlgmr.msra.gmra.mxu1 %vm728_vm1, %v1472_v52  ;;  %v1488_v43 = vld [vmem:[%s1803_s5] sm:$0xff]  }
  0x37   : > { %1379 = vmatprep.mubr.msk.bf16.mxu1 %vm1498_vm0, %v1497_v38  ;;  %1364 = vmatpush3.bf16.msra.mxu1 %v1473_v57 }
  0x38   : > { %1365 = vmatprep.subr.bf16.mxu1 %v1497_v38 }
  0x39   : > { %1322 = vmatpush3.bf16.msra.mxu0 %v1459_v44  ;;  %v1251_v44 = vld [vmem:[%s1802_s4] ss:$0 sm:$0xff] }
  0x3a   : > { %1323 = vmatprep.subr.bf16.mxu0 %v1460_v45 }
  0x3b   : > { %1366 = vmatpush3.bf16.msra.mxu1 %v1474_v58 }
  0x3c   : > { %1367 = vmatprep.subr.bf16.mxu1 %v1497_v38 }
  0x3d   : > { %1324 = vmatpush3.bf16.msra.mxu0 %v1461_v46 }
  0x3e   : > { %1325 = vmatprep.subr.bf16.mxu0 %v1462_v47 }
  0x3f   : > { %1368 = vmatpush3.bf16.msra.mxu1 %v1475_v59 }
  0x40   : > { %1369 = vmatprep.subr.bf16.mxu1 %v1497_v38 }
  0x41   : > { %1326 = vmatpush3.bf16.msra.mxu0 %v1463_v49 }
  0x42   : > { %1327 = vmatprep.subr.bf16.mxu0 %v1464_v51 }
  0x43   : > { %1370 = vmatpush3.bf16.msra.mxu1 %v1476_v60 }
  0x44   : > { %1371 = vmatprep.subr.bf16.mxu1 %v1497_v38 }
  0x45   : > { %1328 = vmatpush3.bf16.msra.mxu0 %v1465_v53 }
  0x46   : > { %1329 = vmatprep.subr.bf16.mxu0 %v1466_v54 }
  0x47   : > { %1372 = vmatpush3.bf16.msra.mxu1 %v1477_v61 }
  0x48   : > { %1373 = vmatprep.subr.bf16.mxu1 %v1497_v38 }
  0x49   : > { %1330 = vmatpush3.bf16.msra.mxu0 %v1467_v55 }
  0x4a   : > { %1383 = vmatprep.subr.bf16.mxu0 %v1497_v38 }
  0x4b   : > { %1374 = vmatpush3.bf16.msra.mxu1 %v1478_v62 }
  0x4c   : > { %847 = vmatmul.mubr.bf16.vlgmr.msra.gmra.mxu0 %v1469_v56  ;;  %1375 = vmatprep.subr.bf16.mxu1 %v1497_v38 }
  0x4d   : > { %1399 = vmatprep.mubr.msk.bf16.mxu0 %vm1498_vm0, %v1497_v38  ;;  %1384 = vmatpush3.bf16.msra.mxu0 %v1481_v1 }
  0x4e   : > { %1385 = vmatprep.subr.bf16.mxu0 %v1497_v38 }
  0x4f   : > { %1376 = vmatpush3.bf16.msra.mxu1 %v1479_v63 }
  0x50   : > { %1377 = vmatprep.subr.bf16.mxu1 %v1497_v38 }
  0x51   : > { %1386 = vmatpush3.bf16.msra.mxu0 %v1482_v2 }
  0x52   : > { %1387 = vmatprep.subr.bf16.mxu0 %v1497_v38 }
  0x53   : > { %1378 = vmatpush3.bf16.msra.mxu1 %v1480_v0 }
  0x55   : > { %1388 = vmatpush3.bf16.msra.mxu0 %v1483_v3 }
  0x56   : > { %1389 = vmatprep.subr.bf16.mxu0 %v1497_v38 }
  0x59   : > { %1390 = vmatpush3.bf16.msra.mxu0 %v1484_v4 }
  0x5a   : > { %1391 = vmatprep.subr.bf16.mxu0 %v1497_v38 }
  0x5d   : > { %1392 = vmatpush3.bf16.msra.mxu0 %v1485_v5 }
  0x5e   : > { %1393 = vmatprep.subr.bf16.mxu0 %v1497_v38 }
  0x61   : > { %1394 = vmatpush3.bf16.msra.mxu0 %v1486_v41 }
  0x62   : > { %1395 = vmatprep.subr.bf16.mxu0 %v1497_v38 }
  0x65   : > { %1396 = vmatpush3.bf16.msra.mxu0 %v1487_v42 }
  0x66   : > { %1397 = vmatprep.subr.bf16.mxu0 %v1497_v38  ;;  %v1260_v38 = vld [vmem:[%s1804_s6] ss:$0 sm:$0xff] }
  0x69   : > { %1398 = vmatpush3.bf16.msra.mxu0 %v1488_v43 }
  0xec   : > { %v1287_v9 = vpop.f32.mrf.mxu0 }
  0xee   : > { %v1309_v6 = vpop.f32.mrf.mxu1  ;;  %v1288_v12 = vpop.f32.mrf.mxu0 }
  0xef   : > { %v1289_v17 = vadd.f32 %v1288_v12, %v1287_v9 }
  0xf0   : > { %v1310_v7 = vpop.f32.mrf.mxu1  ;;  %v1290_v15 = vpop.f32.mrf.mxu0 }
  0xf1   : > { %v767_v20 = vadd.f32 %v1289_v17, %v1193_v18  ;;  %v1311_v21 = vadd.f32 %v1310_v7, %v1309_v6 }
  0xf2   : > { %v1312_v8 = vpop.f32.mrf.mxu1  ;;  %v1291_v19 = vpop.f32.mrf.mxu0 }
  0xf3   : > { %v1292_v22 = vadd.f32 %v1291_v19, %v1290_v15  ;;  %v808_v25 = vadd.f32 %v1311_v21, %v767_v20 }
  0xf4   : > { %v1313_v10 = vpop.f32.mrf.mxu1 }
  0xf5   : > { %v770_v26 = vadd.f32 %v1292_v22, %v1193_v18  ;;  %v1314_v27 = vadd.f32 %v1313_v10, %v1312_v8 }
  0xf6   : > { %v889_v11 = vpop.f32.mrf.mxu1 }
  0xf7   : > { %v811_v32 = vadd.f32 %v1314_v27, %v770_v26 }
  0xf8   : > { %v1361_v13 = vpop.f32.mrf.mxu1 }
  0xfa   : > { %v892_v14 = vpop.f32.mrf.mxu1 }
  0xfc   : > { %v1362_v16 = vpop.f32.mrf.mxu1 }
 0x10c   : > { %v1331_v23 = vpop.f32.mrf.mxu0 }
 0x10e   : > { %v1332_v24 = vpop.f32.mrf.mxu0 }
 0x10f   : > { %v1333_v28 = vadd.f32 %v1332_v24, %v1331_v23 }
 0x110   : > { %v1334_v29 = vpop.f32.mrf.mxu0 }
 0x111   : > { %v849_v30 = vadd.f32 %v1333_v28, %v808_v25 }
 0x112   : > { %v1335_v31 = vpop.f32.mrf.mxu0 }
 0x113   : > { %v1336_v33 = vadd.f32 %v1335_v31, %v1334_v29  ;;  %v890_v34 = vadd.f32 %v889_v11, %v849_v30 }
 0x115   : > { %v852_v35 = vadd.f32 %v1336_v33, %v811_v32  ;;  %v896_v37 = vmax.f32 %v890_v34, 0.0 }
 0x117   : > { %v893_v36 = vadd.f32 %v892_v14, %v852_v35 }
 0x119   : > { %v897_v39 = vmax.f32 %v893_v36, 0.0 }
 0x11b   : > { %v898_v40 = vpack.c.bf16 %v897_v39, %v896_v37 }
 0x11d   : > { %1380 = vmatmul.mubr.bf16.vlgmr.msra.gmra.mxu1 %v898_v40 }
 0x1dd   : > { %v1004_v45 = vpop.f32.mrf.mxu1 }
 0x1de   : > { %v1005_v47 = vadd.f32 %v1251_v44, %v1004_v45 }
 0x1df   : > { %v1381_v46 = vpop.f32.mrf.mxu1 }
 0x1e0   : > { %v1011_v51 = vmax.f32 %v1005_v47, 0.0 }
 0x1e1   : > { %v1007_v48 = vpop.f32.mrf.mxu1 }
 0x1e2   : > { %v1008_v49 = vadd.f32 %v1251_v44, %v1007_v48 }
 0x1e3   : > { %v1382_v50 = vpop.f32.mrf.mxu1 }
 0x1e4   : > { %v1012_v52 = vmax.f32 %v1008_v49, 0.0 }
 0x1e6   : > { %v1013_v53 = vpack.c.bf16 %v1012_v52, %v1011_v51 }
 0x1e8   : > { %1400 = vmatmul.mubr.bf16.vlgmr.msra.gmra.mxu0 %v1013_v53 }
 0x2a8   : > { %v1119_v54 = vpop.f32.mrf.mxu0 }
 0x2a9   : > { %v1120_v55 = vadd.f32 %v1260_v38, %v1119_v54 }
 0x2aa   : > { %v1401_v56 = vpop.f32.mrf.mxu0 }
 0x2ab   : > { %1126 = vst [vmem:[%s283_s21] sm:$0xff] %v1120_v55 }
 0x2ac   : > { %v1122_v57 = vpop.f32.mrf.mxu0 }
 0x2ad   : > { %v1123_v58 = vadd.f32 %v1260_v38, %v1122_v57 }
 0x2ae   : > { %v1402_v59 = vpop.f32.mrf.mxu0 }
 0x2af   : > { %1127 = vst [vmem:[%s283_s21 + $0x8] sm:$0xff] %v1123_v58 }
 0x2b0 PF: > { %s17_s24 = sadd.s32 1, %s1495_s24  }
 0x2b1   : > { %p14_p4 = scmp.ge.s32.totalorder %s17_s24, 4  }
 0x2b3   :  { %16 = sbr.rel (!%p14_p4) target bundleno = 1 (0x1), region = 78 }

</bundles_post_ra>
